<compile_context>
chip_gen: v5e
topology: v5e:2x2
jax: 0.10.0
libtpu: 0.0.40
codegen_flags: <defaults>
</compile_context>

<pallas_src>
import jax
import jax.numpy as jnp
from jax.experimental import pallas as pl
from jax.experimental.pallas import tpu as pltpu


def _luong_concat_attn_kernel(qproj_ref, enc_ref, bias_ref, we_ref, v_ref,
                              ctx_ref, wts_ref):
    tb, s, d_enc = enc_ref.shape
    a = we_ref.shape[1]

    enc = enc_ref[...]                                           # [TB, S, D_enc] bf16

    # One big MXU matmul over the flattened (TB*S) rows, f32 accumulation.
    # (S should preferably be a multiple of 8 so the reshape is a free view.)
    proj = jnp.dot(enc.reshape(tb * s, d_enc), we_ref[...],
                   preferred_element_type=jnp.float32)           # [TB*S, A] f32
    proj = proj.reshape(tb, s, a)

    # energies = tanh(q @ W_q + enc @ W_e); q @ W_q was precomputed in the wrapper.
    e = jnp.tanh(proj + qproj_ref[...][:, None, :])              # [TB, S, A] f32

    # scores = energies @ v, as broadcast-multiply + lane reduce (VPU/XLU slots),
    # avoiding an N=1 MXU matmul and a sublane->lane reshape of a [S,1] result.
    scores = jnp.sum(e * v_ref[...][None, :, :], axis=-1)        # [TB, S] f32
    scores = scores + bias_ref[...]                              # additive mask bias

    # softmax over the sequence (lane) axis, all f32.
    m = jnp.max(scores, axis=-1, keepdims=True)
    p = jnp.exp(scores - m)
    w = p * pl.reciprocal(jnp.sum(p, axis=-1, keepdims=True), approx=False)

    wts_ref[...] = w                                             # [TB, S]

    # context = weights @ encoder_hidden_states (batched, f32 accumulation).
    ctx = jnp.einsum("bqs,bsd->bqd", w.reshape(tb, 1, s).astype(enc.dtype), enc,
                     preferred_element_type=jnp.float32)         # [TB, 1, D_enc]
    ctx_ref[...] = ctx.reshape(tb, d_enc)


def _choose_block_b(B, S, D_enc):
    # Keep the double-buffered bf16 encoder tile comfortably inside even v7x's
    # 64 MiB VMEM (budget ~8 MiB for the enc stream, leaving ample headroom).
    budget_bytes = 8 * 1024 * 1024
    per_row = 2 * S * D_enc * 2          # double buffer * bf16 bytes per batch row
    cap = max(1, budget_bytes // max(per_row, 1))
    cap = min(cap, 512)
    if B <= cap:
        return B                          # single step; block == full batch dim
    return max(8, (cap // 8) * 8)         # multiple of 8 for the sublane tiling rule


def luong_concat_attention(query_state, encoder_hidden_states, w_c, v_w,
                           attention_mask=None):
    """
    query_state           : [B, D_dec]
    encoder_hidden_states : [B, S, D_enc]
    w_c                   : [A, D_dec + D_enc]   (nn.Linear weight, no bias)
    v_w                   : [1, A]               (nn.Linear weight, no bias)
    attention_mask        : optional [B, S] (nonzero = keep)
    returns (context_vector [B, D_enc], attention_weights [B, S])
    """
    B, D_dec = query_state.shape
    _, S, D_enc = encoder_hidden_states.shape
    A = w_c.shape[0]
    A_pad = max(128, ((A + 127) // 128) * 128)

    f32 = jnp.float32
    q = jnp.asarray(query_state, f32)
    enc = jnp.asarray(encoder_hidden_states, f32)
    w_c = jnp.asarray(w_c, f32)
    v_w = jnp.asarray(v_w, f32)

    # Split W_c; hoist the query projection (one [B,D_dec]@[D_dec,A] XLA matmul).
    wq = w_c[:, :D_dec].T                                        # [D_dec, A]
    we = w_c[:, D_dec:].T                                        # [D_enc, A]
    qproj = q @ wq                                               # [B, A] f32

    # Zero-pad A to a multiple of 128 lanes (padded columns contribute exactly 0).
    qproj_p = jnp.zeros((B, A_pad), f32).at[:, :A].set(qproj)
    we_p = jnp.zeros((D_enc, A_pad), f32).at[:, :A].set(we).astype(jnp.bfloat16)
    v_p = jnp.zeros((1, A_pad), f32).at[:, :A].set(v_w)

    # Encoder states streamed in bf16 (dominant HBM traffic); accumulation stays f32.
    enc_bf = enc.astype(jnp.bfloat16)

    # masked_fill(mask == 0, -1e9) as an additive bias.
    if attention_mask is None:
        bias = jnp.zeros((B, S), f32)
    else:
        mask = jnp.asarray(attention_mask).reshape(B, S)
        bias = jnp.where(mask == 0, f32(-1e9), f32(0.0))

    # Batch tile + padding so every block evenly divides the (padded) batch.
    TB = _choose_block_b(B, S, D_enc)
    B_pad = pl.cdiv(B, TB) * TB
    if B_pad != B:
        pad = B_pad - B
        qproj_p = jnp.pad(qproj_p, ((0, pad), (0, 0)))
        enc_bf = jnp.pad(enc_bf, ((0, pad), (0, 0), (0, 0)))
        bias = jnp.pad(bias, ((0, pad), (0, 0)))

    grid_spec = pltpu.PrefetchScalarGridSpec(
        num_scalar_prefetch=0,
        grid=(B_pad // TB,),
        in_specs=[
            pl.BlockSpec((TB, A_pad), lambda b: (b, 0)),         # q @ W_q   (f32)
            pl.BlockSpec((TB, S, D_enc), lambda b: (b, 0, 0)),   # enc       (bf16)
            pl.BlockSpec((TB, S), lambda b: (b, 0)),             # mask bias (f32)
            pl.BlockSpec((D_enc, A_pad), lambda b: (0, 0)),      # W_e       (bf16)
            pl.BlockSpec((1, A_pad), lambda b: (0, 0)),          # v         (f32)
        ],
        out_specs=[
            pl.BlockSpec((TB, D_enc), lambda b: (b, 0)),         # context
            pl.BlockSpec((TB, S), lambda b: (b, 0)),             # weights (lane-dense)
        ],
    )

    cost = pl.CostEstimate(
        flops=2 * B_pad * S * (D_enc * A_pad + A_pad + D_enc),
        transcendentals=B_pad * S * (A_pad + 1),
        bytes_accessed=(B_pad * S * D_enc * 2 + B_pad * A_pad * 4 + B_pad * S * 4
                        + D_enc * A_pad * 2 + A_pad * 4
                        + B_pad * D_enc * 4 + B_pad * S * 4),
    )

    ctx, wts = pl.pallas_call(
        _luong_concat_attn_kernel,
        out_shape=(
            jax.ShapeDtypeStruct((B_pad, D_enc), f32),
            jax.ShapeDtypeStruct((B_pad, S), f32),
        ),
        grid_spec=grid_spec,
        compiler_params=pltpu.CompilerParams(
            dimension_semantics=("parallel",),
            vmem_limit_bytes=48 * 1024 * 1024,
        ),
        cost_estimate=cost,
    )(qproj_p, enc_bf, bias, we_p, v_p)

    return ctx[:B], wts[:B]


def _reference(query_state, encoder_hidden_states, w_c, v_w, attention_mask=None):
    B, S, _ = encoder_hidden_states.shape
    tq = jnp.broadcast_to(query_state[:, None, :], (B, S, query_state.shape[-1]))
    cat = jnp.concatenate([tq, encoder_hidden_states], axis=2)
    energies = jnp.tanh(cat @ w_c.T)
    scores = (energies @ v_w.T)[..., 0]
    if attention_mask is not None:
        scores = jnp.where(attention_mask == 0, -1e9, scores)
    weights = jax.nn.softmax(scores, axis=1)
    ctx = jnp.einsum("bs,bsd->bd", weights, encoder_hidden_states)
    return ctx, weights


if __name__ == "__main__":
    # Small deterministic shapes: B=2, S=8, decoder_hidden=32, encoder_hidden=32, attn_hidden=16
    B, S, D_DEC, D_ENC, A = 2, 8, 32, 32, 16
    key = jax.random.PRNGKey(0)
    k1, k2, k3, k4, k5 = jax.random.split(key, 5)

    query_state = jax.random.normal(k1, (B, D_DEC), jnp.float32)
    encoder_hidden_states = jax.random.normal(k2, (B, S, D_ENC), jnp.float32)
    # deterministic "nn.Linear"-style weights (synthetic, not a checkpoint)
    w_c = jax.random.uniform(k3, (A, D_DEC + D_ENC), jnp.float32,
                             minval=-0.1, maxval=0.1)
    v_w = jax.random.uniform(k4, (1, A), jnp.float32, minval=-0.2, maxval=0.2)
    # a mask with a couple of zeroed positions
    attention_mask = (jax.random.uniform(k5, (B, S)) > 0.2).astype(jnp.float32)

    ctx, wts = luong_concat_attention(query_state, encoder_hidden_states,
                                      w_c, v_w, attention_mask)
    jax.block_until_ready((ctx, wts))

    ctx_ref, wts_ref = _reference(query_state, encoder_hidden_states,
                                  w_c, v_w, attention_mask)

    # Weights are computed in f32 inside the kernel -> rows must sum to 1 tightly.
    assert jnp.allclose(jnp.sum(wts, axis=-1), 1.0, atol=1e-5)
    # Encoder states / W_e are intentionally streamed in bf16, so tolerance vs the
    # all-f32 reference is correspondingly looser.
    assert jnp.allclose(wts, wts_ref, atol=2e-2, rtol=2e-2)
    assert jnp.allclose(ctx, ctx_ref, atol=2e-2, rtol=2e-2)

    print("KERNEL_OK")
</pallas_src>

<mosaic_0001>
module attributes {stable_mosaic.version = 11 : i64} {
  func.func @_luong_concat_attn_kernel(%arg0: i32, %arg1: memref<2x128xf32, #tpu.memory_space<vmem>>, %arg2: memref<2x8x32xbf16, #tpu.memory_space<vmem>>, %arg3: memref<2x8xf32, #tpu.memory_space<vmem>>, %arg4: memref<32x128xbf16, #tpu.memory_space<vmem>>, %arg5: memref<1x128xf32, #tpu.memory_space<vmem>>, %arg6: memref<2x32xf32, #tpu.memory_space<vmem>>, %arg7: memref<2x8xf32, #tpu.memory_space<vmem>>) attributes {dimension_semantics = [#tpu.dimension_semantics<parallel>], iteration_bounds = array<i64: 1>, scalar_prefetch = 0 : i64, scratch_operands = 0 : i64, tpu.core_type = #tpu.core_type<tc>, window_params = [{transform_indices = @transform_0, window_bounds = array<i64: 2, 128>}, {transform_indices = @transform_1, window_bounds = array<i64: 2, 8, 32>}, {transform_indices = @transform_2, window_bounds = array<i64: 2, 8>}, {pipeline_mode = #tpu.pipeline_mode<synchronous>, transform_indices = @transform_3, window_bounds = array<i64: 32, 128>}, {pipeline_mode = #tpu.pipeline_mode<synchronous>, transform_indices = @transform_4, window_bounds = array<i64: 1, 128>}, {transform_indices = @transform_5, window_bounds = array<i64: 2, 32>}, {transform_indices = @transform_6, window_bounds = array<i64: 2, 8>}]} {
    %c0 = arith.constant 0 : index
    %c0_0 = arith.constant 0 : index
    %c0_1 = arith.constant 0 : index
    %0 = vector.load %arg2[%c0, %c0_0, %c0_1] : memref<2x8x32xbf16, #tpu.memory_space<vmem>>, vector<2x8x32xbf16>
    %1 = vector.shape_cast %0 : vector<2x8x32xbf16> to vector<16x32xbf16>
    %c0_2 = arith.constant 0 : index
    %c0_3 = arith.constant 0 : index
    %2 = vector.load %arg4[%c0_2, %c0_3] : memref<32x128xbf16, #tpu.memory_space<vmem>>, vector<32x128xbf16>
    %cst = arith.constant dense<0.000000e+00> : vector<16x128xf32>
    %3 = tpu.matmul %1, %2, %cst {dimension_numbers = #tpu.dot_dimension_numbers<[1], [0], [0], [1], [0, 0, 1, 1], [], []>} : vector<16x32xbf16>, vector<32x128xbf16>, vector<16x128xf32> -> vector<16x128xf32>
    %4 = vector.shape_cast %3 : vector<16x128xf32> to vector<2x8x128xf32>
    %c0_4 = arith.constant 0 : index
    %c0_5 = arith.constant 0 : index
    %5 = vector.load %arg1[%c0_4, %c0_5] : memref<2x128xf32, #tpu.memory_space<vmem>>, vector<2x128xf32>
    %6 = vector.shape_cast %5 : vector<2x128xf32> to vector<2x1x128xf32>
    %7 = vector.broadcast %6 : vector<2x1x128xf32> to vector<2x8x128xf32>
    %8 = arith.addf %4, %7 : vector<2x8x128xf32>
    %9 = math.tanh %8 : vector<2x8x128xf32>
    %c0_6 = arith.constant 0 : index
    %c0_7 = arith.constant 0 : index
    %10 = vector.load %arg5[%c0_6, %c0_7] : memref<1x128xf32, #tpu.memory_space<vmem>>, vector<1x128xf32>
    %11 = vector.shape_cast %10 : vector<1x128xf32> to vector<1x1x128xf32>
    %12 = vector.broadcast %11 : vector<1x1x128xf32> to vector<2x8x128xf32>
    %13 = arith.mulf %9, %12 : vector<2x8x128xf32>
    %cst_8 = arith.constant dense<0.000000e+00> : vector<2x8xf32>
    %14 = vector.multi_reduction <add>, %13, %cst_8 [2] : vector<2x8x128xf32> to vector<2x8xf32>
    %c0_9 = arith.constant 0 : index
    %c0_10 = arith.constant 0 : index
    %15 = vector.load %arg3[%c0_9, %c0_10] : memref<2x8xf32, #tpu.memory_space<vmem>>, vector<2x8xf32>
    %16 = arith.addf %14, %15 : vector<2x8xf32>
    %cst_11 = arith.constant dense<0xFF800000> : vector<2xf32>
    %17 = vector.multi_reduction <maximumf>, %16, %cst_11 [1] : vector<2x8xf32> to vector<2xf32>
    %18 = vector.shape_cast %17 : vector<2xf32> to vector<2x1xf32>
    %19 = vector.broadcast %18 : vector<2x1xf32> to vector<2x8xf32>
    %20 = arith.subf %16, %19 : vector<2x8xf32>
    %21 = math.exp %20 : vector<2x8xf32>
    %cst_12 = arith.constant dense<0.000000e+00> : vector<2xf32>
    %22 = vector.multi_reduction <add>, %21, %cst_12 [1] : vector<2x8xf32> to vector<2xf32>
    %23 = vector.shape_cast %22 : vector<2xf32> to vector<2x1xf32>
    %24 = tpu.reciprocal %23 : vector<2x1xf32> -> vector<2x1xf32>
    %25 = vector.broadcast %24 : vector<2x1xf32> to vector<2x8xf32>
    %26 = arith.mulf %21, %25 : vector<2x8xf32>
    %c0_13 = arith.constant 0 : index
    %c0_14 = arith.constant 0 : index
    %27 = vector.load %arg7[%c0_13, %c0_14] : memref<2x8xf32, #tpu.memory_space<vmem>>, vector<2x8xf32>
    tpu.vector_store %arg7[%c0_13, %c0_14], %26 {strides = array<i32>} : memref<2x8xf32, #tpu.memory_space<vmem>>, vector<2x8xf32>,
    %28 = vector.shape_cast %26 : vector<2x8xf32> to vector<2x1x8xf32>
    %29 = arith.truncf %28 : vector<2x1x8xf32> to vector<2x1x8xbf16>
    "tpu.trace_start"() <{level = 10 : i32, message = "bqs,bsd->bqd"}> : () -> ()
    %cst_15 = arith.constant dense<0.000000e+00> : vector<2x1x32xf32>
    %30 = tpu.matmul %29, %0, %cst_15 {dimension_numbers = #tpu.dot_dimension_numbers<[2], [1], [1], [2], [0, 0, 0, 1, 1, 2], [0], [0]>} : vector<2x1x8xbf16>, vector<2x8x32xbf16>, vector<2x1x32xf32> -> vector<2x1x32xf32>
    "tpu.trace_stop"() : () -> ()
    %31 = vector.shape_cast %30 : vector<2x1x32xf32> to vector<2x32xf32>
    %c0_16 = arith.constant 0 : index
    %c0_17 = arith.constant 0 : index
    %32 = vector.load %arg6[%c0_16, %c0_17] : memref<2x32xf32, #tpu.memory_space<vmem>>, vector<2x32xf32>
    tpu.vector_store %arg6[%c0_16, %c0_17], %31 {strides = array<i32>} : memref<2x32xf32, #tpu.memory_space<vmem>>, vector<2x32xf32>,
    return
  }
  func.func @transform_0(%arg0: i32) -> (i32, i32) {
    %c0_i32 = arith.constant 0 : i32
    %c0_i32_0 = arith.constant 0 : i32
    return %arg0, %c0_i32 : i32, i32
  }
  func.func @transform_1(%arg0: i32) -> (i32, i32, i32) {
    %c0_i32 = arith.constant 0 : i32
    %c0_i32_0 = arith.constant 0 : i32
    %c0_i32_1 = arith.constant 0 : i32
    return %arg0, %c0_i32, %c0_i32_0 : i32, i32, i32
  }
  func.func @transform_2(%arg0: i32) -> (i32, i32) {
    %c0_i32 = arith.constant 0 : i32
    %c0_i32_0 = arith.constant 0 : i32
    return %arg0, %c0_i32 : i32, i32
  }
  func.func @transform_3(%arg0: i32) -> (i32, i32) {
    %c0_i32 = arith.constant 0 : i32
    %c0_i32_0 = arith.constant 0 : i32
    %c0_i32_1 = arith.constant 0 : i32
    return %c0_i32, %c0_i32_0 : i32, i32
  }
  func.func @transform_4(%arg0: i32) -> (i32, i32) {
    %c0_i32 = arith.constant 0 : i32
    %c0_i32_0 = arith.constant 0 : i32
    %c0_i32_1 = arith.constant 0 : i32
    return %c0_i32, %c0_i32_0 : i32, i32
  }
  func.func @transform_5(%arg0: i32) -> (i32, i32) {
    %c0_i32 = arith.constant 0 : i32
    %c0_i32_0 = arith.constant 0 : i32
    return %arg0, %c0_i32 : i32, i32
  }
  func.func @transform_6(%arg0: i32) -> (i32, i32) {
    %c0_i32 = arith.constant 0 : i32
    %c0_i32_0 = arith.constant 0 : i32
    return %arg0, %c0_i32 : i32, i32
  }
}

</mosaic_0001>

<bundles_post_ra>
// kernel: tpu_custom_call.1
= control target key start
LH: loop header
LB: loop body
LE: loop exit
PB: predicated region body
PF: predicated region fallthrough
CT: control target
= control target key end

     0   :  { %12 = vsyncpa [#allocation3], 0  ;;  %s627_s0 = inlined_call_operand.hbm [shape: f32[2,128], index: 0, kind: input, shape index: {}]   ;;  %s628_s1 = inlined_call_operand.hbm [shape: bf16[2,8,32], index: 1, kind: input, shape index: {}]   ;;  %s629_s2 = inlined_call_operand.hbm [shape: f32[2,8], index: 2, kind: input, shape index: {}]   ;;  %s630_s3 = inlined_call_operand.hbm [shape: bf16[32,128], index: 3, kind: input, shape index: {}]   ;;  %s631_s4 = inlined_call_operand.vmem [shape: f32[1,128], index: 4, kind: input, shape index: {}]   ;;  %s632_s5 = inlined_call_operand.hbm [shape: f32[2,32], index: 5, kind: output, shape index: {0}]   ;;  %s633_s6 = inlined_call_operand.hbm [shape: f32[2,8], index: 6, kind: output, shape index: {1}]  }
   0x1   :  { %13 = vsyncpa [#allocation6], 0 }
   0x2   :  { %14 = vsyncpa [#allocation9], 0 }
   0x3   :  { %15 = vsyncpa [#allocation4], 0  ;;  %s32_s23 = sshll.u32 %s628_s1, 4  ;;  %s33_s23 = int_to_ptr.hbm [resolvable:$true] %s32_s23 }
   0x4   :  { %16 = vsyncpa [#allocation12], 0  ;;  %s545_s24 = smov [#allocation5]   ;;  %s22_s28 = sshll.u32 %s627_s0, 4  ;;  %s23_s28 = int_to_ptr.hbm [resolvable:$true] %s22_s28 }
   0x5   :  { %s34_s25 = sshll.u32 %s545_s24, 4  ;;  %s546_s29 = smov 64   ;;  %s35_s25 = int_to_ptr.vmem [resolvable:$true] %s34_s25 }
   0x6   :  { %s547_s30 = smov 4   ;;  %s548_s7 = smov [#allocation2]  }
   0x7   :  { %40 = dma.hbm_to_vmem [thread:$0]  %s33_s23, 128, %s35_s25, [#allocation6], %s546_s29, %s546_s29, %s547_s30  }
   0x8   :  { %s24_s8 = sshll.u32 %s548_s7, 4  ;;  %s46_s11 = sshll.u32 %s629_s2, 4  ;;  %s25_s8 = int_to_ptr.vmem [resolvable:$true] %s24_s8  ;;  %s47_s11 = int_to_ptr.hbm [resolvable:$true] %s46_s11 }
   0x9   :  { %27 = dma.hbm_to_vmem [thread:$0]  %s23_s28, 32, %s25_s8, [#allocation3]  }
   0xa   :  { %s56_s13 = sshll.u32 %s630_s3, 4  ;;  %s549_s14 = smov [#allocation7]   ;;  %s57_s13 = int_to_ptr.hbm [resolvable:$true] %s56_s13 }
   0xb   :  { %s48_s15 = sshll.u32 %s549_s14, 4  ;;  %s550_s0 = smov [#allocation8]   ;;  %s49_s15 = int_to_ptr.vmem [resolvable:$true] %s48_s15 }
   0xc   :  { %51 = dma.hbm_to_vmem [thread:$0]  %s47_s11, 32, %s49_s15, [#allocation6]  }
   0xd   :  { %s58_s16 = sshll.u32 %s550_s0, 4  ;;  %s59_s16 = int_to_ptr.vmem [resolvable:$true] %s58_s16 }
   0xe   :  { %64 = dma.hbm_to_vmem [thread:$0]  %s57_s13, 256, %s59_s16, [#allocation9], %s546_s29, %s546_s29, %s547_s30  }
   0xf   :  { %535 = dma.done.wait [#allocation3], 32  }
  0x10   :  { %536 = vsyncadd [#allocation3], 4294967264 }
  0x11   :  { %537 = dma.done.wait [#allocation6], 160  }
  0x12   :  { %538 = vsyncadd [#allocation6], 4294967136 }
  0x13   :  { %539 = dma.done.wait [#allocation9], 256  }
  0x14   :  { %540 = vsyncadd [#allocation9], 4294967040  ;;  %v149_v0 = vlaneseq  ;;  %v366_v2 = vld [vmem:[#allocation8 + $0x8] sm:$0xff]  ;;  %v365_v3 = vld [vmem:[#allocation8] sm:$0xff]  ;;  %vm107_vm0 = vcmask 261120   ;;  %v551_v21 = vmov 0  }
  0x15   :  { %117 = vmatpush.bf16.msra.mxu0 %v366_v2  ;;  %v364_v4 = vld [vmem:[#allocation5] sm:$0xff]  ;;  %v146_v5 = vld [vmem:[#allocation7] sm:$0x3]  ;;  %v125_v8 = vld [vmem:[#allocation2] sm:$0x3]  ;;  %377 = vset.pattern.permute.xlu2 %v551_v21  ;;  %vm178_vm1 = vcmask 1041409  }
  0x16   :  { %v150_v1 = vshrl.u32 %v149_v0, 7  ;;  %v148_v6 = vperm.slane %v146_v5, 0  ;;  %v155_v7 = vperm.slane %v146_v5, 1  ;;  %v128_v9 = vperm.slane %v125_v8, 0  ;;  %v380_v14 = vld [vmem:[%s631_s4] ss:$0 sm:$0xff]  ;;  %379 = vset.pattern.permute.xlu0 %v551_v21 }
  0x17   :  { %v127_v12 = vrot.slane %v125_v8, 1  ;;  %v604_v29 = vand.u32 127, %v149_v0  ;;  %vm181_vm2 = vcmask 58368   ;;  %vm260_vm7 = vcmask 1043456   ;;  %s552_s4 = smov [#allocation11]   ;;  %s330_s20 = sshll.u32 %s633_s6, 4  ;;  %s331_s20 = int_to_ptr.hbm [resolvable:$true] %s330_s20 }
  0x18   :  { %376 = vset.pattern.permute.xlu1 %v150_v1  ;;  %vm256_vm8 = vcmask 64512   ;;  %s328_s17 = sshll.u32 %s552_s4, 4  ;;  %s553_s21 = smov [#allocation10]   ;;  %vm310_vm9 = vcmask 254976   ;;  %s329_s17 = int_to_ptr.vmem [resolvable:$true] %s328_s17 }
  0x19   :  { %118 = vmatpush.bf16.msra.mxu0 %v365_v3  ;;  %v129_v13 = vperm.slane %v127_v12, 0  ;;  %s317_s22 = sshll.u32 %s553_s21, 4  ;;  %s319_s25 = sshll.u32 %s632_s5, 4  ;;  %s318_s22 = int_to_ptr.vmem [resolvable:$true] %s317_s22  ;;  %s320_s25 = int_to_ptr.hbm [resolvable:$true] %s319_s25 }
  0x1c   :  { %359 = vmatmul.msk.bf16.vlgmr.msra.gmra.mxu0 %vm107_vm0, %v364_v4 }
  0x20   :  { %153 = vperm.xlu1 %376, %v148_v6  }
  0x28   :  { %160 = vperm.xlu1 %376, %v155_v7   ;;  %v84_v7 = vld [vmem:[#allocation5] sm:$0xf] }
  0x29   :  { %v262_v8 = vsel %vm260_vm7, %v84_v7, 0 }
  0x2a   :  { %271 = vmatpush.bf16.msra.mxu1 %v262_v8 }
  0x30   :  { %378 = vset.pattern.permute.xlu1 %v551_v21 }
  0x92   :  { %v154_v22 = vpop.permute.xlu1 %153 }
  0x99   :  { %v120_v10 = vpop.f32.mrf.mxu0 }
  0x9a   :  { %v132_v11 = vadd.f32 %v128_v9, %v120_v10  ;;  %v161_v25 = vpop.permute.xlu1 %160  ;;  %v85_v9 = vld [vmem:[#allocation5 + $0x4] sm:$0xf] }
  0x9b   :  { %v290_v10 = vsel %vm260_vm7, %v85_v9, 0 }
  0x9c   :  { %381 = vtanh.f32 %v132_v11  ;;  %299 = vmatpush.bf16.msra.mxu2 %v290_v10 }
  0xa1   :  { %v122_v15 = vpop.f32.mrf.mxu0 }
  0xa2   :  { %v382_v16 = vpop.eup %381  ;;  %v133_v17 = vadd.f32 %v129_v13, %v122_v15 }
  0xa3   :  { %v140_v18 = vmul.f32 %v382_v16, %v380_v14 }
  0xa4   :  { %383 = vtanh.f32 %v133_v17 }
  0xa5   :  { %142 = vadd.xlane.f32.xlu0 %v140_v18 }
  0xaa   :  { %v384_v19 = vpop.eup %383 }
  0xab   :  { %v141_v20 = vmul.f32 %v384_v19, %v380_v14 }
  0xad   :  { %144 = vadd.xlane.f32.xlu0 %v141_v20 }
 0x118   :  { %v143_v23 = vpop.xlane.xlu0 %142 }
 0x119   :  { %v164_v24 = vadd.f32 %v154_v22, %v143_v23 }
 0x11b   :  { %169 = vperm.xlu2 %377, %v164_v24  }
 0x120   :  { %v145_v26 = vpop.xlane.xlu0 %144 }
 0x121   :  { %v165_v27 = vadd.f32 %v161_v25, %v145_v26 }
 0x123   :  { %172 = vperm.xlu2 %377, %v165_v27  }
 0x175   :  { %v170_v28 = vpop.permute.xlu2 %169 }
 0x176   :  { %v176_v31 = vperm.slane %v170_v28, %v604_v29 }
 0x17d   :  { %v173_v30 = vpop.permute.xlu2 %172 }
 0x17e   :  { %v177_v32 = vperm.slane %v173_v30, %v604_v29 }
 0x180   :  { %v179_v33 = vsel %vm178_vm1, %v177_v32, %v176_v31 }
 0x181   :  { %v182_v34 = vsel %vm181_vm2, %v179_v33, -inf }
 0x182   :  { %183 = vmax.xlane.f32.xlu0 %v182_v34 }
 0x1f5   :  { %v184_v35 = vpop.xlane.xlu0 %183 }
 0x1f6   :  { %v186_v36 = vperm.slane %v184_v35, 0  ;;  %v187_v37 = vperm.slane %v184_v35, 1 }
 0x1f8   :  { %v190_v38 = vsub.f32 %v164_v24, %v186_v36  ;;  %v191_v39 = vsub.f32 %v165_v27, %v187_v37 }
 0x1fa   :  { %v192_v40 = vmul.f32 1.442695, %v190_v38  ;;  %v194_v41 = vmul.f32 1.442695, %v191_v39 }
 0x1fc   :  { %385 = vpow2.f32 %v192_v40 }
 0x1fd   :  { %387 = vpow2.f32 %v194_v41 }
 0x202   :  { %v386_v42 = vpop.eup %385 }
 0x203   :  { %v388_v43 = vpop.eup %387  ;;  %199 = vperm.xlu1 %378, %v386_v42  }
 0x204   :  { %202 = vperm.xlu2 %377, %v388_v43  }
 0x25e   :  { %v203_v44 = vpop.permute.xlu2 %202 }
 0x25f   :  { %v205_v46 = vperm.slane %v203_v44, %v604_v29 }
 0x275   :  { %v200_v45 = vpop.permute.xlu1 %199 }
 0x276   :  { %v204_v47 = vperm.slane %v200_v45, %v604_v29 }
 0x278   :  { %v206_v48 = vsel %vm178_vm1, %v205_v46, %v204_v47 }
 0x279   :  { %v208_v49 = vsel %vm181_vm2, %v206_v48, 0.0 }
 0x27a   :  { %209 = vadd.xlane.f32.xlu0 %v208_v49 }
 0x2ed   :  { %v210_v50 = vpop.xlane.xlu0 %209 }
 0x2ee   :  { %389 = vrcp.f32 %v210_v50  ;;  %v222_v54 = vand.u32 2147483648, %v210_v50  ;;  %v220_v56 = vand.u32 2147483647, %v210_v50  ;;  %vm216_vm4 = vweird.f32 %v210_v50 }
 0x2f0   :  { %v223_v58 = vor.u32 1.1754944e-38, %v222_v54  ;;  %vm221_vm6 = vcmp.eq.f32.partialorder %v220_v56, 8.507059e+37 }
 0x2f4   :  { %v390_v51 = vpop.eup %389 }
 0x2f5   :  { %v212_v52 = vmul.f32 %v390_v51, %v210_v50  ;;  %vm217_vm3 = vweird.f32 %v390_v51 }
 0x2f6   :  { %vm218_vm5 = vmor %vm216_vm4, %vm217_vm3 }
 0x2f7   :  { %v213_v53 = vsub.f32 1.0, %v212_v52 }
 0x2f9   :  { %v214_v55 = vmul.f32 %v390_v51, %v213_v53 }
 0x2fb   :  { %v215_v57 = vadd.f32 %v390_v51, %v214_v55 }
 0x2fd   :  { %v219_v59 = vsel %vm218_vm5, %v390_v51, %v215_v57 }
 0x2fe   :  { %v224_v60 = vsel %vm221_vm6, %v223_v58, %v219_v59 }
 0x2ff   :  { %v226_v61 = vperm.slane %v224_v60, 0  ;;  %v227_v62 = vperm.slane %v224_v60, 1 }
 0x301   :  { %v230_v63 = vmul.f32 %v386_v42, %v226_v61  ;;  %v231_v0 = vmul.f32 %v388_v43, %v227_v62 }
 0x303   :  { %235 = vperm.xlu0 %379, %v230_v63   ;;  %v246_v1 = vpack.c.bf16 %v231_v0, %v231_v0  ;;  %v245_v2 = vpack.c.bf16 %v230_v63, %v230_v63 }
 0x305   :  { %v278_v3 = vunpack.c.l.b16 %v246_v1  ;;  %v248_v4 = vunpack.c.l.b16 %v245_v2 }
 0x307   :  { %v362_v5 = vunpack.i.l.s16 %v278_v3  ;;  %v360_v6 = vunpack.i.l.s16 %v248_v4 }
 0x309   :  { %282 = vperm.xlu1 %378, %v362_v5   ;;  %252 = vperm.xlu2 %377, %v360_v6  }
 0x311   :  { %238 = vperm.xlu1 %378, %v231_v0  }
 0x363   :  { %v253_v11 = vpop.permute.xlu2 %252 }
 0x364   :  { %v254_v12 = vperm.slane %v253_v11, %v604_v29 }
 0x366   :  { %v255_v13 = vpack.c.b16 %v254_v12, %v254_v12 }
 0x368   :  { %361 = vmatmul.msk.bf16.vlgmr.msra.gmra.mxu1 %vm256_vm8, %v255_v13 }
 0x375   :  { %v236_v17 = vpop.permute.xlu0 %235 }
 0x376   :  { %v240_v19 = vperm.slane %v236_v17, %v604_v29 }
 0x37b   :  { %v283_v14 = vpop.permute.xlu1 %282 }
 0x37c   :  { %v284_v15 = vperm.slane %v283_v14, %v604_v29 }
 0x37e   :  { %v285_v16 = vpack.c.b16 %v284_v15, %v284_v15 }
 0x380   :  { %363 = vmatmul.msk.bf16.vlgmr.msra.gmra.mxu2 %vm256_vm8, %v285_v16 }
 0x383   :  { %v239_v18 = vpop.permute.xlu1 %238 }
 0x384   :  { %v241_v20 = vperm.slane %v239_v18, %v604_v29 }
 0x386   :  { %v242_v21 = vsel %vm178_vm1, %v241_v20, %v240_v19 }
 0x387   :  { %244 = vst.msk [vmem:[#allocation11] sm:$0x3] %vm181_vm2, %v242_v21 }
 0x388   :  { %333 = dma.vmem_to_hbm [thread:$0]  %s329_s17, 32, %s331_s20, [#allocation12]  }
 0x3e5   :  { %v273_v22 = vpop.f32.mrf.mxu1 }
 0x3ed   :  { %v275_v23 = vpop.f32.mrf.mxu1 }
 0x403   :  { %v301_v24 = vpop.f32.mrf.mxu2 }
 0x404   :  { %v307_v25 = vrot.slane %v301_v24, 7 }
 0x406   :  { %v308_v26 = vsel %vm178_vm1, %v307_v25, %v273_v22 }
 0x407   :  { %311 = vst.msk [vmem:[#allocation10] sm:$0x3] %vm310_vm9, %v308_v26 }
 0x408   :  { %322 = dma.vmem_to_hbm [thread:$0]  %s318_s22, 32, %s320_s25, [#allocation4]  }
 0x40b   :  { %v303_v27 = vpop.f32.mrf.mxu2 }
 0x40c   :  { %541 = dma.done.wait [#allocation4], 32  }
 0x40d   :  { %542 = vsyncadd [#allocation4], 4294967264 }
 0x40e   :  { %543 = dma.done.wait [#allocation12], 32  }
 0x40f   :  { %544 = vsyncadd [#allocation12], 4294967264 }
 0x410   :  { %342 = vsyncpa [#allocation3], 1 }
 0x411   :  { %343 = vsyncpa [#allocation6], 1 }
 0x412   :  { %344 = vsyncpa [#allocation9], 1 }
 0x413   :  { %345 = vsyncpa [#allocation4], 1 }
 0x414   :  { %346 = vsyncpa [#allocation12], 1 }

</bundles_post_ra>
